<compile_context>
chip_gen: v7x
topology: tpu7x:2x2x1
jax: 0.10.0
libtpu: 0.0.40
codegen_flags: <defaults>
</compile_context>

<pallas_src>
import functools

import jax
import jax.numpy as jnp
from jax.experimental import pallas as pl
from jax.experimental.pallas import tpu as pltpu


def _se_kernel(x_ref, w1_ref, w2_ref, o_ref, *, inv_hw):
    # x_ref/o_ref: (b_blk, C, HW)   w1_ref: (C, Crp)   w2_ref: (Crp, C)
    x = x_ref[...]                                   # native dtype, single tile read

    # Squeeze: f32-accumulated global average pool over the spatial (lane) axis.
    pooled = jnp.sum(x, axis=-1, dtype=jnp.float32) * inv_hw          # (b_blk, C)

    # Pad batch rows up to a multiple of 8 sublanes for the tiny GEMMs
    # (zero rows are mathematically inert and sliced off below).
    b_blk = pooled.shape[0]
    pad_rows = (-b_blk) % 8
    if pad_rows:
        pooled = jnp.concatenate(
            [pooled, jnp.zeros((pad_rows, pooled.shape[1]), jnp.float32)], axis=0)

    # Excitation: FC -> ReLU -> FC -> Sigmoid (no biases), all in f32.
    h = jnp.maximum(
        jnp.dot(pooled, w1_ref[...], preferred_element_type=jnp.float32), 0.0)
    y = jax.nn.sigmoid(
        jnp.dot(h, w2_ref[...], preferred_element_type=jnp.float32))
    y = y[:b_blk]                                                     # (b_blk, C)

    # Scale: broadcast the channel gate over the spatial axis in the input dtype.
    o_ref[...] = x * y.astype(x.dtype)[:, :, None]


def _vmem_budget_bytes():
    """Usable VMEM per TensorCore, leaving headroom for Mosaic internal scratch."""
    try:
        cap = int(pltpu.get_tpu_info().vmem_capacity_bytes)
    except Exception:
        cap = 64 * 1024 * 1024          # conservative fallback (v7x: 64 MiB / TC)
    return cap * 3 // 4                 # ~48 MiB on v7x, ~96 MiB on v5e/v6e


def _weight_spec(shape):
    """Constant-index weight block: stays VMEM-resident across the batch loop.

    Single-buffered (pipeline_mode=pl.Buffered(1)) when the installed JAX
    supports it — saves one weight-sized buffer per weight.
    """
    idx = lambda b: (0, 0)
    if hasattr(pl, "Buffered"):
        try:
            return pl.BlockSpec(shape, idx, pipeline_mode=pl.Buffered(1))
        except TypeError:
            pass
    return pl.BlockSpec(shape, idx)


def se_layer(x_nchw, w1, w2, *, b_blk=None, donate_input=False):
    """SE layer forward.

    x_nchw: (B, C, H, W); w1: (C, C//r); w2: (C//r, C) (weights pre-transposed
    relative to torch.nn.Linear so the kernel computes plain y @ W).
    """
    B, C, H, W = x_nchw.shape
    HW = H * W
    Cr = w1.shape[1]
    itemsize = jnp.dtype(x_nchw.dtype).itemsize

    # Pad the bottleneck dim Cr up to 8 (zero rows/cols are mathematically inert).
    Crp = max(Cr, 8)
    if Crp != Cr:
        w1 = jnp.pad(w1, ((0, 0), (0, Crp - Cr)))
        w2 = jnp.pad(w2, ((0, Crp - Cr), (0, 0)))
    w_bytes = (C * Crp + Crp * C) * jnp.dtype(w1.dtype).itemsize

    vmem_cap = _vmem_budget_bytes()
    elem_bytes = C * HW * itemsize                 # one batch element's (C, HW) slab

    if b_blk is None:
        # HBM-bound kernel: target multi-MiB streaming blocks (~4 MiB) to
        # amortize the ~0.35 us per-grid-step overhead, while
        #   (a) fitting double-buffered in+out blocks plus resident weights in
        #       the per-generation VMEM budget, and
        #   (b) keeping grid >= 2 whenever B >= 2 so DMA overlaps compute and
        #       v7x can shard the batch axis across both TensorCores.
        target_block_bytes = 4 * 1024 * 1024
        b_blk = max(1, target_block_bytes // elem_bytes)
        vmem_for_blocks = max(vmem_cap - 2 * w_bytes - (1 << 20), 4 * elem_bytes)
        b_blk = min(b_blk, max(1, vmem_for_blocks // (4 * elem_bytes)))
        if B >= 2:
            b_blk = min(b_blk, -(-B // 2))         # ceil(B/2): at least 2 grid steps
        b_blk = max(1, min(b_blk, B))
    b_blk = int(b_blk)

    grid = (pl.cdiv(B, b_blk),)
    x = x_nchw.reshape(B, C, HW)                   # no spatial padding / slicing

    # VMEM budget: double-buffered in + out blocks, resident weights, headroom.
    block_bytes = b_blk * elem_bytes
    vmem_needed = 4 * block_bytes + 2 * w_bytes + (1 << 20)
    vmem_limit = int(min(max(vmem_needed, 32 * 1024 * 1024), vmem_cap))

    kernel = functools.partial(_se_kernel, inv_hw=1.0 / float(HW))

    cost = pl.CostEstimate(
        flops=2 * B * C * HW + 4 * B * C * Crp,
        transcendentals=B * C,
        bytes_accessed=2 * B * C * HW * itemsize + w_bytes,
    )

    call_kwargs = {}
    if donate_input:
        # In/out shapes+dtypes match exactly, so the result can be written in place.
        call_kwargs["input_output_aliases"] = {0: 0}

    out = pl.pallas_call(
        kernel,
        out_shape=jax.ShapeDtypeStruct((B, C, HW), x.dtype),
        grid=grid,
        in_specs=[
            pl.BlockSpec((b_blk, C, HW), lambda b: (b, 0, 0)),
            _weight_spec((C, Crp)),
            _weight_spec((Crp, C)),
        ],
        out_specs=pl.BlockSpec((b_blk, C, HW), lambda b: (b, 0, 0)),
        compiler_params=pltpu.CompilerParams(
            dimension_semantics=("parallel",),
            vmem_limit_bytes=vmem_limit,
        ),
        cost_estimate=cost,
        **call_kwargs,
    )(x, w1, w2)

    return out.reshape(B, C, H, W)


def se_layer_ref(x_nchw, w1, w2):
    """Pure-JAX reference mirroring the PyTorch forward."""
    pooled = jnp.mean(x_nchw.astype(jnp.float32), axis=(2, 3))          # (B, C)
    h = jnp.maximum(pooled @ w1, 0.0)
    y = jax.nn.sigmoid(h @ w2)
    return (x_nchw.astype(jnp.float32) * y[:, :, None, None]).astype(x_nchw.dtype)


if __name__ == "__main__":
    key = jax.random.PRNGKey(0)

    # Case 1: n_channels=32, reduction=16, HW a multiple of 128; B=2 -> b_blk=1,
    # grid=2 (pipelined, megacore-splittable).
    B, C, H, W = 2, 32, 16, 16
    Cr = C // 16
    kx, k1, k2, key = jax.random.split(key, 4)
    x = jax.random.normal(kx, (B, C, H, W), dtype=jnp.float32)
    w1 = jax.random.normal(k1, (C, Cr), dtype=jnp.float32) * 0.1
    w2 = jax.random.normal(k2, (Cr, C), dtype=jnp.float32) * 0.1
    out = jax.block_until_ready(se_layer(x, w1, w2))
    ref = se_layer_ref(x, w1, w2)
    assert out.shape == (B, C, H, W)
    assert jnp.allclose(out, ref, atol=1e-5, rtol=1e-5), "mismatch vs reference (case 1)"

    # Case 2: HW not a multiple of 128 (masked tail stores) and B=3 with
    # b_blk=2 -> ragged final batch block (masked overhanging output rows).
    B2, C2, H2, W2 = 3, 32, 7, 7
    Cr2 = C2 // 16
    kx, k1, k2, key = jax.random.split(key, 4)
    x2 = jax.random.normal(kx, (B2, C2, H2, W2), dtype=jnp.float32)
    w1b = jax.random.normal(k1, (C2, Cr2), dtype=jnp.float32) * 0.1
    w2b = jax.random.normal(k2, (Cr2, C2), dtype=jnp.float32) * 0.1
    out2 = jax.block_until_ready(se_layer(x2, w1b, w2b))
    ref2 = se_layer_ref(x2, w1b, w2b)
    assert out2.shape == (B2, C2, H2, W2)
    assert jnp.allclose(out2, ref2, atol=1e-5, rtol=1e-5), "mismatch vs reference (case 2)"

    # Case 3: explicit ragged final block with a forced block size.
    out3 = jax.block_until_ready(se_layer(x2, w1b, w2b, b_blk=2))
    assert jnp.allclose(out3, ref2, atol=1e-5, rtol=1e-5), "mismatch vs reference (case 3)"

    print("KERNEL_OK")
</pallas_src>

<mosaic_0001>
module attributes {stable_mosaic.version = 11 : i64} {
  func.func @_se_kernel(%arg0: i32, %arg1: memref<1x32x256xf32, #tpu.memory_space<vmem>>, %arg2: memref<32x8xf32, #tpu.memory_space<vmem>>, %arg3: memref<8x32xf32, #tpu.memory_space<vmem>>, %arg4: memref<1x32x256xf32, #tpu.memory_space<vmem>>) attributes {dimension_semantics = [#tpu.dimension_semantics<parallel>], iteration_bounds = array<i64: 2>, scalar_prefetch = 0 : i64, scratch_operands = 0 : i64, tpu.core_type = #tpu.core_type<tc>, window_params = [{transform_indices = @transform_0, window_bounds = array<i64: 1, 32, 256>}, {pipeline_mode = #tpu.pipeline_mode<synchronous>, transform_indices = @transform_1, window_bounds = array<i64: 32, 8>}, {pipeline_mode = #tpu.pipeline_mode<synchronous>, transform_indices = @transform_2, window_bounds = array<i64: 8, 32>}, {transform_indices = @transform_3, window_bounds = array<i64: 1, 32, 256>}]} {
    %c0 = arith.constant 0 : index
    %c0_0 = arith.constant 0 : index
    %c0_1 = arith.constant 0 : index
    %0 = vector.load %arg1[%c0, %c0_0, %c0_1] : memref<1x32x256xf32, #tpu.memory_space<vmem>>, vector<1x32x256xf32>
    %cst = arith.constant dense<0.000000e+00> : vector<1x32xf32>
    %1 = vector.multi_reduction <add>, %0, %cst [2] : vector<1x32x256xf32> to vector<1x32xf32>
    %cst_2 = arith.constant 3.906250e-03 : f32
    %2 = vector.broadcast %cst_2 : f32 to vector<1x32xf32>
    %3 = arith.mulf %1, %2 : vector<1x32xf32>
    %cst_3 = arith.constant 0.000000e+00 : f32
    %4 = vector.broadcast %cst_3 : f32 to vector<7x32xf32>
    %5 = tpu.concatenate %3, %4 in 0 : vector<1x32xf32>, vector<7x32xf32> -> vector<8x32xf32>
    %c0_4 = arith.constant 0 : index
    %c0_5 = arith.constant 0 : index
    %6 = vector.load %arg2[%c0_4, %c0_5] : memref<32x8xf32, #tpu.memory_space<vmem>>, vector<32x8xf32>
    %cst_6 = arith.constant dense<0.000000e+00> : vector<8x8xf32>
    %7 = tpu.matmul %5, %6, %cst_6 {dimension_numbers = #tpu.dot_dimension_numbers<[1], [0], [0], [1], [0, 0, 1, 1], [], []>} : vector<8x32xf32>, vector<32x8xf32>, vector<8x8xf32> -> vector<8x8xf32>
    %cst_7 = arith.constant 0.000000e+00 : f32
    %8 = vector.broadcast %cst_7 : f32 to vector<8x8xf32>
    %9 = arith.maximumf %7, %8 : vector<8x8xf32>
    %c0_8 = arith.constant 0 : index
    %c0_9 = arith.constant 0 : index
    %10 = vector.load %arg3[%c0_8, %c0_9] : memref<8x32xf32, #tpu.memory_space<vmem>>, vector<8x32xf32>
    %cst_10 = arith.constant dense<0.000000e+00> : vector<8x32xf32>
    %11 = tpu.matmul %9, %10, %cst_10 {dimension_numbers = #tpu.dot_dimension_numbers<[1], [0], [0], [1], [0, 0, 1, 1], [], []>} : vector<8x8xf32>, vector<8x32xf32>, vector<8x32xf32> -> vector<8x32xf32>
    %12 = arith.negf %11 : vector<8x32xf32>
    %13 = math.exp %12 : vector<8x32xf32>
    %cst_11 = arith.constant 1.000000e+00 : f32
    %14 = vector.broadcast %cst_11 : f32 to vector<8x32xf32>
    %15 = arith.addf %14, %13 : vector<8x32xf32>
    %16 = arith.divf %14, %15 : vector<8x32xf32>
    %17 = vector.extract_strided_slice %16 {offsets = [0, 0], sizes = [1, 32], strides = [1, 1]} : vector<8x32xf32> to vector<1x32xf32>
    %18 = vector.shape_cast %17 : vector<1x32xf32> to vector<1x32x1xf32>
    %19 = vector.broadcast %18 : vector<1x32x1xf32> to vector<1x32x256xf32>
    %20 = arith.mulf %0, %19 : vector<1x32x256xf32>
    %c0_12 = arith.constant 0 : index
    %c0_13 = arith.constant 0 : index
    %c0_14 = arith.constant 0 : index
    %21 = vector.load %arg4[%c0_12, %c0_13, %c0_14] : memref<1x32x256xf32, #tpu.memory_space<vmem>>, vector<1x32x256xf32>
    tpu.vector_store %arg4[%c0_12, %c0_13, %c0_14], %20 {strides = array<i32>} : memref<1x32x256xf32, #tpu.memory_space<vmem>>, vector<1x32x256xf32>,
    return
  }
  func.func @transform_0(%arg0: i32) -> (i32, i32, i32) {
    %c0_i32 = arith.constant 0 : i32
    %c0_i32_0 = arith.constant 0 : i32
    %c0_i32_1 = arith.constant 0 : i32
    return %arg0, %c0_i32, %c0_i32_0 : i32, i32, i32
  }
  func.func @transform_1(%arg0: i32) -> (i32, i32) {
    %c0_i32 = arith.constant 0 : i32
    %c0_i32_0 = arith.constant 0 : i32
    %c0_i32_1 = arith.constant 0 : i32
    return %c0_i32, %c0_i32_0 : i32, i32
  }
  func.func @transform_2(%arg0: i32) -> (i32, i32) {
    %c0_i32 = arith.constant 0 : i32
    %c0_i32_0 = arith.constant 0 : i32
    %c0_i32_1 = arith.constant 0 : i32
    return %c0_i32, %c0_i32_0 : i32, i32
  }
  func.func @transform_3(%arg0: i32) -> (i32, i32, i32) {
    %c0_i32 = arith.constant 0 : i32
    %c0_i32_0 = arith.constant 0 : i32
    %c0_i32_1 = arith.constant 0 : i32
    return %arg0, %c0_i32, %c0_i32_0 : i32, i32, i32
  }
}

</mosaic_0001>

<bundles_post_ra>
// kernel: tpu_custom_call.1
= control target key start
LH: loop header
LB: loop body
LE: loop exit
PB: predicated region body
PF: predicated region fallthrough
CT: control target
= control target key end

     0   :  { %8 = vsyncpa [#allocation3], 0  ;;  %s974_s0 = inlined_call_operand.hbm [shape: f32[2,32,256], index: 0, kind: input, shape index: {}]   ;;  %s975_s1 = inlined_call_operand.vmem [shape: f32[32,8], index: 1, kind: input, shape index: {}]   ;;  %s976_s2 = inlined_call_operand.vmem [shape: f32[8,32], index: 2, kind: input, shape index: {}]   ;;  %s977_s3 = inlined_call_operand.hbm [shape: f32[2,32,256], index: 3, kind: output, shape index: {}]  }
   0x1   :  { %10 = vsyncpa [#allocation3 + $0x1], 0 }
   0x2   :  { %11 = vsyncpa [#allocation4], 0 }
   0x3   :  { %13 = vsyncpa [#allocation4 + $0x1], 0  ;;  %s761_s12 = smov 0   ;;  %s763_s13 = smov 0  }
   0x4   :  { %s765_s14 = smov 0   ;;  %s767_s15 = smov 0  }
   0x5 LB: > { %s782_s16 = sadd.s32 4294967295, %s730_s15   ;;  %s529_s17 = sadd.s32 4294967294, %s730_s15   ;;  %s730_s15 = sphi %s767_s15, %s990_s15   ;;  %s726_s14 = sphi %s765_s14, %s989_s14   ;;  %s722_s13 = sphi %s763_s13, %s988_s13   ;;  %s718_s12 = sphi %s761_s12, %s987_s12  }
   0x6   : > { %s786_s18 = sadd.s32 1, %s730_s15   ;;  %s26_s19 = sadd.s32 1, %s726_s14 }
   0x7   : > { %s23_s20 = ssub.s32 %s730_s15, %s786_s18  ;;  %p33_p0 = scmp.ne.s32.totalorder %s726_s14, %s722_s13 }
   0x8   : > { %p24_p1 = scmp.eq.s32.totalorder %s23_s20, 0  ;;  %p34_p2 = scmp.eq.s32.totalorder %s730_s15, 0 }
   0x9   : > { %p39_p3 = scmp.ne.s32.totalorder %s722_s13, %s718_s12  ;;  %p40_p4 = scmp.eq.s32.totalorder %s782_s16, 0 }
   0xa   : > { %s798_s21 = scalar_select %p24_p1, %s726_s14, %s26_s19  }
   0xb   : > { %p800_p5 = por %p34_p2, %p33_p0  ;;  %p804_p6 = por %p40_p4, %p39_p3 }
   0xc   : > { %p105_p7 = scmp.eq.s32.totalorder %s782_s16, 1  ;;  %p111_p8 = scmp.eq.s32.totalorder %s529_s17, 1 }
   0xd   : > { %p589_p10 = scmp.lt.s32.totalorder %s730_s15, 2  ;;  %s137_s26 = sand.u32 1, %s726_s14  }
   0xe   : > { %p811_p11 = por %p105_p7, %p33_p0  ;;  %p815_p12 = por %p111_p8, %p39_p3 }
   0xf   : > { %s546_s27 = sshll.u32 %s730_s15, 10  ;;  %s532_s28 = sshll.u32 %s137_s26, 6 }
  0x10   : > { %s981_s24 = scalar_select %p811_p11, 1, 0 }
  0x11   : > { %s982_s25 = scalar_select %p815_p12, 1, 0 }
  0x12   : > { %s824_s4 = scalar_lea.hbm %s974_s0, %s546_s27  ;;  %s141_s5 = scalar_lea.vmem [#allocation2], %s532_s28 }
  0x13   : > { %s148_s6 = sshll.u32 %s141_s5, 4  ;;  %p828_p13 = pnand %p589_p10, %p800_p5  ;;  %s832_s6 = int_to_ptr.vmem [resolvable:$true] %s148_s6 }
  0x14   : > { %s834_s8 = scalar_lea.sflag [#allocation3], %s137_s26  ;;  %s634_s9 = scalar_lea.hbm %s824_s4, 1024 }
  0x15   : > { %p635_p0 = scmp.ne.s32.totalorder %s824_s4, %s634_s9  ;;  %p636_p1 = pneg %p828_p13 }
  0x16   : > { %s639_s17 = scalar_lea.hbm %s974_s0, 2048  ;;  %p640_p4 = scmp.lt.u32.totalorder %s824_s4, %s974_s0 }
  0x17   : > { %p637_p2 = pnand %p636_p1, %p635_p0  ;;  %p641_p5 = scmp.lt.u32.totalorder %s639_s17, %s634_s9 }
  0x18   : > { %p643_p8 = scmp.lt.u32.totalorder %s634_s9, %s824_s4 }
  0x19   : > { %p638_p3 = pneg %p637_p2  ;;  %p642_p7 = por %p641_p5, %p640_p4 }
  0x1b   : > { %p644_p10 = por %p643_p8, %p642_p7 }
  0x1d   : > { %p645_p9 = pnand %p644_p10, %p638_p3 }
  0x1f   : > { %648 = shalt.err (!%p645_p9)
}
  0x20   : > { %s649_s22 = scalar_lea.vmem %s832_s6, 1024  ;;  %s732_s26 = smov [#allocation2]  }
  0x21   : > { %p650_p0 = scmp.ne.s32.totalorder %s832_s6, %s649_s22  ;;  %s654_s27 = sshll.u32 %s732_s26, 4  ;;  %s655_s27 = int_to_ptr.vmem [resolvable:$false] %s654_s27 }
  0x22   : > { %s656_s28 = scalar_lea.vmem %s655_s27, 2048  ;;  %p657_p11 = scmp.lt.s32.totalorder %s832_s6, %s655_s27 }
  0x23   : > { %p652_p2 = pnand %p650_p0, %p636_p1  ;;  %p658_p4 = scmp.lt.s32.totalorder %s656_s28, %s649_s22 }
  0x25   : > { %p653_p12 = pneg %p652_p2  ;;  %p659_p5 = por %p658_p4, %p657_p11 }
  0x27   : > { %p660_p7 = pnand %p659_p5, %p653_p12 }
  0x29   : > { %663 = shalt.err (!%p660_p7)
}
  0x2a   : > { %s733_s29 = smov 256   ;;  %s734_s30 = smov 16  }
  0x2b   : > { %584 = dma.hbm_to_vmem [thread:$0]  (!%p828_p13), %s824_s4, 1024, %s832_s6, %s834_s8, %s733_s29, %s733_s29, %s734_s30  }
  0x2c   : > { %p535_p9 = scmp.ge.s32.totalorder %s730_s15, 1  ;;  %p156_p1 = scmp.lt.s32.totalorder %s730_s15, 3 }
  0x2e   : > { %p157_p3 = pnand %p535_p9, %p156_p1 }
  0x2f   : > { %s865_s5 = sand.u32 (!%p157_p3), 1, %s722_s13  }
  0x30   : > { %160 = sbr.rel (%p157_p3) target bundleno = 807 (0x327), region = 32  ;;  %s536_s9 = sshll.u32 (!%p157_p3), %s865_s5, 6 }
  0x31   : > { %s163_s10 = scalar_lea.sflag (!%p157_p3), [#allocation3], %s865_s5  ;;  %s166_s11 = scalar_lea.vmem (!%p157_p3), [#allocation2], %s536_s9 }
  0x37   : > { %709 = dma.done.wait (%p804_p6), %s163_s10, 1024  }
  0x38   : > { %711 = vsyncadd (%p804_p6), %s163_s10, 4294966272  ;;  %v875_v0 = vld [vmem:[%s166_s11] sm:$0xff]  ;;  %v877_v1 = vld [vmem:[%s166_s11 + $0x8] sm:$0xff]  ;;  %v735_v15 = vmov 0.0|0.0   ;;  %vm736_vm0 = vmmov 0   ;;  %v737_v19 = vmov 0.0   ;;  %v217_v20 = vlaneseq }
  0x39   : > { %v879_v2 = vld [vmem:[%s166_s11 + $0x20] sm:$0xff]  ;;  %v197_v3 = vadd.f32 %v877_v1, %v875_v0  ;;  %v883_v4 = vld [vmem:[%s166_s11 + $0x28] sm:$0xff]  ;;  %v885_v5 = vld [vmem:[%s166_s11 + $0x10] sm:$0xff]  ;;  %571 = vmatprep.subr.bf16.mxu0 %v735_v15  ;;  %563 = vmatprep.mubr.msk.f32.mxu0 %vm736_vm0, %v737_v19  ;;  %vm228_vm1 = vcmask 130112   ;;  %vm235_vm2 = vcmask 195712   ;;  %vm242_vm3 = vcmask 261312  }
  0x3a   : > { %v887_v6 = vld [vmem:[%s166_s11 + $0x18] sm:$0xff]  ;;  %v203_v7 = vadd.f32 %v883_v4, %v879_v2  ;;  %v891_v8 = vld [vmem:[%s166_s11 + $0x30] sm:$0xff]  ;;  %v247_v12 = vld [vmem:[%s975_s1] sm:$0xff]  ;;  %566 = vmatprep.subr.mxu1 %v737_v19  ;;  %568 = vmatprep.mubr.msk.f32.mxu1 %vm736_vm0, %v737_v19  ;;  %v218_v21 = vand.u32 127, %v217_v20  ;;  %v220_v22 = vshrl.u32 %v217_v20, 7  ;;  %vm245_vm4 = vcmask 1040384  }
  0x3b   : > { %v893_v9 = vld [vmem:[%s166_s11 + $0x38] sm:$0xff]  ;;  %198 = vadd.xlane.f32.xlu0 %v197_v3  ;;  %v200_v10 = vadd.f32 %v887_v6, %v885_v5  ;;  %v248_v13 = vld [vmem:[%s975_s1 + $0x8] sm:$0xff]  ;;  %v249_v16 = vld [vmem:[%s975_s1 + $0x10] sm:$0xff]  ;;  %vm251_vm5 = vcmask 261120   ;;  %vm327_vm6 = vcmask 64512   ;;  %s188_s27 = scalar_lea.vmem [#allocation5], %s536_s9 }
  0x3c   : > { %204 = vadd.xlane.f32.xlu1 %v203_v7  ;;  %v206_v11 = vadd.f32 %v893_v9, %v891_v8  ;;  %v572_v14 = vpack.c.bf16 %v248_v13, %v247_v12  ;;  %v250_v17 = vld [vmem:[%s975_s1 + $0x18] sm:$0xff]  ;;  %v223_v23 = vadd.s32 4294967288, %v218_v21  ;;  %v230_v25 = vadd.s32 4294967280, %v218_v21  ;;  %v326_v46 = vld [vmem:[%s976_s2] sm:$0xff]  ;;  %s456_s28 = sshll.u32 %s188_s27, 4  ;;  %s547_s29 = sshll.u32 %s782_s16, 10  ;;  %s923_s28 = int_to_ptr.vmem [resolvable:$true] %s456_s28 }
  0x3d   : > { %v575_v18 = vpack.c.bf16 %v250_v17, %v249_v16  ;;  %v237_v26 = vadd.s32 4294967272, %v218_v21  ;;  %v221_v28 = vsub.s32 %v218_v21, %v220_v22  ;;  %567 = vmatpush3.msra.mxu1 %v326_v46  ;;  %v409_v55 = vsub.s32 0, %v220_v22  ;;  %s928_s10 = scalar_lea.hbm %s977_s3, %s547_s29  ;;  %s443_s16 = scalar_lea.sflag [#allocation4], %s865_s5 }
  0x3e   : > { %573 = vmatpush3.bf16.msra.mxu0 %v572_v14  ;;  %v226_v30 = vsub.s32 %v223_v23, %v220_v22  ;;  %v233_v31 = vsub.s32 %v230_v25, %v220_v22  ;;  %s664_s11 = scalar_lea.vmem %s923_s28, 1024  ;;  %p984_p11 = scmp.ne.s32.totalorder %s981_s24, 0 }
  0x3f   : > { %201 = vadd.xlane.f32.xlu0 %v200_v10  ;;  %574 = vmatprep.subr.bf16.mxu0 %v735_v15  ;;  %v240_v34 = vsub.s32 %v237_v26, %v220_v22  ;;  %p665_p6 = scmp.ne.s32.totalorder %s923_s28, %s664_s11  ;;  %s738_s23 = smov [#allocation5]  }
  0x40   : > { %207 = vadd.xlane.f32.xlu1 %v206_v11  ;;  %s668_s4 = sshll.u32 %s738_s23, 4  ;;  %s669_s4 = int_to_ptr.vmem [resolvable:$false] %s668_s4 }
  0x41   : > { %p666_p12 = pnand %p665_p6, %p984_p11  ;;  %s670_s6 = scalar_lea.vmem %s669_s4, 2048 }
  0x42   : > { %576 = vmatpush3.bf16.msra.mxu0 %v575_v18  ;;  %p671_p8 = scmp.lt.s32.totalorder %s923_s28, %s669_s4  ;;  %p672_p10 = scmp.lt.s32.totalorder %s670_s6, %s664_s11 }
  0x43   : > { %p667_p13 = pneg %p666_p12 }
  0x44   : > { %p673_p0 = por %p672_p10, %p671_p8 }
  0x46   : > { %p674_p2 = pnand %p673_p0, %p667_p13 }
  0xc8   : > { %v199_v24 = vpop.xlane.xlu0 %198 }
  0xc9   : > { %v205_v27 = vpop.xlane.xlu1 %204  ;;  %v209_v29 = vmul.f32 0.00390625, %v199_v24 }
  0xca   : > { %v211_v32 = vmul.f32 0.00390625, %v205_v27 }
  0xcb   : > { %v222_v38 = vrot.slane %v209_v29, %v221_v28 }
  0xcc   : > { %v202_v33 = vpop.xlane.xlu0 %201  ;;  %v234_v40 = vrot.slane %v211_v32, %v233_v31 }
  0xcd   : > { %v210_v35 = vmul.f32 0.00390625, %v202_v33  ;;  %v208_v36 = vpop.xlane.xlu1 %207 }
  0xce   : > { %v212_v37 = vmul.f32 0.00390625, %v208_v36 }
  0xcf   : > { %v227_v39 = vrot.slane %v210_v35, %v226_v30 }
  0xd0   : > { %v241_v41 = vrot.slane %v212_v37, %v240_v34 }
  0xd1   : > { %v229_v42 = vsel %vm228_vm1, %v227_v39, %v222_v38 }
  0xd2   : > { %v236_v43 = vsel %vm235_vm2, %v234_v40, %v229_v42 }
  0xd3   : > { %v243_v44 = vsel %vm242_vm3, %v241_v41, %v236_v43 }
  0xd4   : > { %v246_v45 = vsel %vm245_vm4, %v243_v44, 0.0 }
  0xd5   : > { %564 = vmatmul.mubr.msk.f32.vlgmr.msra.gmra.mrb[0].mxu0 %vm251_vm5, %v246_v45 }
 0x1a8   : > { %v321_v47 = vpop.f32.mrb[0].mxu0 }
 0x1a9   : > { %v325_v48 = vmax.f32 %v321_v47, 0.0  ;;  %v565_v49 = vpop.f32.mrb[1].mxu0 }
 0x1ab   : > { %569 = vmatmul.mubr.msk.f32.vlgmr.msra.gmra.mrb[0].mxu1 %vm327_vm6, %v325_v48 }
 0x27e   : > { %v397_v50 = vpop.f32.mrb[0].mxu1 }
 0x27f   : > { %v540_v51 = vmul.f32 -1.442695, %v397_v50  ;;  %v570_v52 = vpop.f32.mrb[1].mxu1 }
 0x281   : > { %630 = vpow2.f32 %v540_v51 }
 0x28b   : > { %v631_v53 = vpop.eup %630 }
 0x28c   : > { %v404_v54 = vadd.f32 1.0, %v631_v53 }
 0x28e   : > { %632 = vrcp.f32 %v404_v54 }
 0x298   : > { %v633_v56 = vpop.eup %632 }
 0x299   : > { %v410_v57 = vrot.slane %v633_v56, %v409_v55 }
 0x29b   : > { %416 = vbcast.lane.b32.xlu1 %v410_v57, 264  ;;  %412 = vbcast.lane.b32.xlu0 %v410_v57, 256 }
 0x29f   : > { %420 = vbcast.lane.b32.xlu1 %v410_v57, 272 }
 0x2a3   : > { %424 = vbcast.lane.b32.xlu1 %v410_v57, 280 }
 0x30d   : > { %v417_v58 = vpop.permute.xlu1 %416  ;;  %v413_v59 = vpop.permute.xlu0 %412 }
 0x30e   : > { %v428_v60 = vmul.f32 %v417_v58, %v885_v5  ;;  %v429_v61 = vmul.f32 %v417_v58, %v887_v6  ;;  %v426_v62 = vmul.f32 %v413_v59, %v875_v0  ;;  %v427_v63 = vmul.f32 %v413_v59, %v877_v1 }
 0x310   : > { %436 = vst [vmem:[%s188_s27 + $0x10] sm:$0xff] %v428_v60  ;;  %437 = vst [vmem:[%s188_s27 + $0x18] sm:$0xff] %v429_v61 }
 0x311   : > { %434 = vst [vmem:[%s188_s27] sm:$0xff] %v426_v62  ;;  %435 = vst [vmem:[%s188_s27 + $0x8] sm:$0xff] %v427_v63  ;;  %v421_v3 = vpop.permute.xlu1 %420 }
 0x312   : > { %v430_v7 = vmul.f32 %v421_v3, %v879_v2  ;;  %v431_v5 = vmul.f32 %v421_v3, %v883_v4 }
 0x314   : > { %438 = vst [vmem:[%s188_s27 + $0x20] sm:$0xff] %v430_v7  ;;  %439 = vst [vmem:[%s188_s27 + $0x28] sm:$0xff] %v431_v5 }
 0x315   : > { %v425_v0 = vpop.permute.xlu1 %424 }
 0x316   : > { %v432_v1 = vmul.f32 %v425_v0, %v891_v8  ;;  %v433_v2 = vmul.f32 %v425_v0, %v893_v9 }
 0x318   : > { %440 = vst [vmem:[%s188_s27 + $0x30] sm:$0xff] %v432_v1  ;;  %441 = vst [vmem:[%s188_s27 + $0x38] sm:$0xff] %v433_v2 }
 0x319   : > { %677 = shalt.err (!%p674_p2)
}
 0x31a   : > { %s678_s7 = scalar_lea.hbm %s928_s10, 1024  ;;  %s682_s19 = scalar_lea.hbm %s977_s3, 2048 }
 0x31b   : > { %p679_p4 = scmp.ne.s32.totalorder %s928_s10, %s678_s7  ;;  %p683_p9 = scmp.lt.u32.totalorder %s928_s10, %s977_s3 }
 0x31c   : > { %p684_p1 = scmp.lt.u32.totalorder %s682_s19, %s678_s7  ;;  %p686_p6 = scmp.lt.u32.totalorder %s678_s7, %s928_s10 }
 0x31d   : > { %p680_p5 = pnand %p679_p4, %p984_p11 }
 0x31e   : > { %p685_p3 = por %p684_p1, %p683_p9 }
 0x31f   : > { %p681_p7 = pneg %p680_p5 }
 0x320   : > { %p687_p12 = por %p686_p6, %p685_p3 }
 0x322   : > { %p688_p13 = pnand %p687_p12, %p681_p7 }
 0x324   : > { %691 = shalt.err (!%p688_p13)
}
 0x325   : > { %s739_s26 = smov 256   ;;  %s740_s27 = smov 16  }
 0x326   : > { %579 = dma.vmem_to_hbm [thread:$0]  (%p984_p11), %s923_s28, 1024, %s928_s10, %s443_s16, %s739_s26, %s739_s26, %s740_s27  }
 0x327 PF: > { %s471_s29 = sand.u32 1, %s718_s12   ;;  %p985_p8 = scmp.ne.s32.totalorder %s982_s25, 0 }
 0x328   : > { %p986_p10 = scmp.ge.s32.totalorder %s730_s15, 2  ;;  %s472_s30 = scalar_lea.sflag [#allocation4], %s471_s29 }
 0x32a   : > { %p586_p0 = pnand %p986_p10, %p985_p8 }
 0x32c   : > { %713 = dma.done.wait (!%p586_p0), %s472_s30, 1024  }
 0x32d   : > { %715 = vsyncadd (!%p586_p0), %s472_s30, 4294966272  ;;  %p16_p2 = scmp.ge.s32.totalorder %s786_s18, 4   ;;  %s987_s12 = smov %s722_s13 }
 0x32e   : > { %s988_s13 = smov %s726_s14  ;;  %s989_s14 = smov %s798_s21 }
 0x32f   : > { %s990_s15 = smov %s786_s18  ;;  %18 = sbr.rel (!%p16_p2) target bundleno = 5 (0x5), region = 77 }
 0x336   :  { %477 = vsyncpa [#allocation3], 1 }
 0x337   :  { %479 = vsyncpa [#allocation3 + $0x1], 1 }
 0x338   :  { %480 = vsyncpa [#allocation4], 1 }
 0x339   :  { %482 = vsyncpa [#allocation4 + $0x1], 1 }

</bundles_post_ra>
